<compile_context>
chip_gen: v5e
topology: v5e:2x2
jax: 0.10.0
libtpu: 0.0.40
codegen_flags: <defaults>
</compile_context>

<pallas_src>
import functools

import jax
import jax.numpy as jnp
from jax.experimental import pallas as pl
from jax.experimental.pallas import tpu as pltpu

_LAYER_DIMS = [(24, 512), (512, 256), (256, 128), (128, 2)]


def _mlp_kernel(x_ref, w1_ref, b1_ref, w2_ref, b2_ref,
                w3_ref, b3_ref, w4_ref, b4_ref, o_ref, *, act_dtype):
    cdt = w1_ref.dtype       # MXU operand dtype (bf16 by default, or f32)
    adt = act_dtype          # intermediate / elementwise dtype (bf16 on v6e/v7x)
    # Layer 1: Linear(24 -> 512) + ReLU   (K=24, lane-padded internally by Mosaic)
    h = jnp.dot(x_ref[...].astype(cdt), w1_ref[...], preferred_element_type=adt)
    h = jnp.maximum(h + b1_ref[...], 0.0)
    # drop1: identity in eval mode
    # Layer 2: Linear(512 -> 256) + ReLU
    h = jnp.dot(h.astype(cdt), w2_ref[...], preferred_element_type=adt)
    h = jnp.maximum(h + b2_ref[...], 0.0)
    # drop2: identity in eval mode
    # Layer 3: Linear(256 -> 128) + ReLU
    h = jnp.dot(h.astype(cdt), w3_ref[...], preferred_element_type=adt)
    h = jnp.maximum(h + b3_ref[...], 0.0)
    # drop3: identity in eval mode
    # Output layer: Linear(128 -> 2) + tanh, kept in f32 (tiny byte volume at N=2)
    o = jnp.dot(h.astype(cdt), w4_ref[...], preferred_element_type=jnp.float32)
    o_ref[...] = jnp.tanh(o + b4_ref[...])


def _round_up(n, m):
    return ((n + m - 1) // m) * m


def _default_act_dtype(mxu_dtype):
    """bf16 intermediates only where the VPU is natively bf16 (v6e / v7x)."""
    if mxu_dtype != jnp.bfloat16:
        return jnp.float32
    try:
        kind = jax.devices()[0].device_kind.lower()
    except Exception:
        return jnp.float32
    return jnp.bfloat16 if ("v6" in kind or "v7" in kind) else jnp.float32


def prepare_params(params, *, mxu_dtype=jnp.bfloat16, act_dtype=None):
    """One-time weight/bias preprocessing, hoisted out of the per-call path.

    Weights go to the MXU operand dtype; layer-1..3 biases to the activation
    dtype; the final bias stays f32 (output layer + tanh are f32).
    """
    if act_dtype is None:
        act_dtype = _default_act_dtype(mxu_dtype)
    (w1, b1), (w2, b2), (w3, b3), (w4, b4) = params
    weight_args = (
        w1.astype(mxu_dtype), b1.astype(act_dtype),
        w2.astype(mxu_dtype), b2.astype(act_dtype),
        w3.astype(mxu_dtype), b3.astype(act_dtype),
        w4.astype(mxu_dtype), b4.astype(jnp.float32),
    )
    return weight_args, act_dtype


def regression_net_forward(x, prepared, *, block_b=2048):
    """Fused MLP forward, batch-tiled along a parallel grid axis.

    `prepared` is the output of prepare_params().  x may be f32 or bf16 and is
    streamed as-is (no wrapper-side pad/upcast); it is cast to the MXU operand
    dtype inside the kernel.
    """
    weight_args, act_dtype = prepared
    B, K = x.shape
    assert K == _LAYER_DIMS[0][0]

    tb = min(block_b, _round_up(B, 8))            # sublane-aligned batch tile
    if B >= 16:                                   # keep >= 2 blocks for megacore sharding
        tb = min(tb, _round_up(pl.cdiv(B, 2), 8))
    grid = (pl.cdiv(B, tb),)                      # partial last tile padded by Pallas

    def batch_spec(cols):
        return pl.BlockSpec((tb, cols), lambda i: (i, 0))

    def resident_spec(shape):
        # Constant block index + single buffer -> fetched once, VMEM-resident.
        return pl.BlockSpec(shape, lambda i: (0, 0),
                            pipeline_mode=pl.Buffered(1))

    flops = 2 * B * sum(ki * ko for ki, ko in _LAYER_DIMS)
    bytes_accessed = (x.size * x.dtype.itemsize + B * 2 * 4 +
                      sum(a.size * a.dtype.itemsize for a in weight_args))

    kernel = functools.partial(_mlp_kernel, act_dtype=act_dtype)
    return pl.pallas_call(
        kernel,
        out_shape=jax.ShapeDtypeStruct((B, 2), jnp.float32),
        grid=grid,
        in_specs=[batch_spec(K)] + [resident_spec(a.shape) for a in weight_args],
        out_specs=pl.BlockSpec((tb, 2), lambda i: (i, 0)),
        compiler_params=pltpu.CompilerParams(
            dimension_semantics=("parallel",)),    # megacore shards the batch axis
        cost_estimate=pl.CostEstimate(
            flops=flops, transcendentals=2 * B, bytes_accessed=bytes_accessed),
    )(x, *weight_args)


def init_params(key):
    """Deterministic init mimicking PyTorch Linear default U(+-1/sqrt(fan_in))."""
    params = []
    for (fan_in, fan_out) in _LAYER_DIMS:
        key, kw, kb = jax.random.split(key, 3)
        bound = 1.0 / (fan_in ** 0.5)
        w = jax.random.uniform(kw, (fan_in, fan_out), jnp.float32, -bound, bound)
        b = jax.random.uniform(kb, (1, fan_out), jnp.float32, -bound, bound)
        params.append((w, b))
    return params


def reference_forward(x, params):
    h = x
    for i, (w, b) in enumerate(params):
        h = h @ w + b
        h = jnp.maximum(h, 0.0) if i < len(params) - 1 else jnp.tanh(h)
    return h


if __name__ == "__main__":
    key = jax.random.PRNGKey(0)
    kp, kx = jax.random.split(key)
    params = init_params(kp)

    # Small test batch; deliberately not a multiple of the batch tile so the
    # partial-tile (block padding) path is exercised.
    B = 90
    x = jax.random.normal(kx, (B, 24), jnp.float32)
    ref = reference_forward(x, params)

    # f32 MXU operands: exact path, small tile to force a multi-step grid.
    prep_f32 = prepare_params(params, mxu_dtype=jnp.float32)
    out_f32 = jax.block_until_ready(
        regression_net_forward(x, prep_f32, block_b=32))
    assert out_f32.shape == (B, 2), out_f32.shape
    assert jnp.allclose(out_f32, ref, atol=1e-4, rtol=1e-4), "f32 mismatch vs reference"

    # Default fast path: bf16 MXU operands (+ bf16 intermediates on v6e/v7x),
    # default batch tile.
    prep_bf16 = prepare_params(params)
    out_bf16 = jax.block_until_ready(regression_net_forward(x, prep_bf16))
    assert out_bf16.shape == (B, 2), out_bf16.shape
    assert jnp.allclose(out_bf16, ref, atol=5e-2, rtol=5e-2), "bf16 mismatch vs reference"

    # TODO(synk): training-mode Dropout (stochastic masks) is intentionally not
    # implemented; eval-mode dropout is the identity and is folded away.
    print("KERNEL_OK")
</pallas_src>

<mosaic_0001>
module attributes {stable_mosaic.version = 11 : i64} {
  func.func @_mlp_kernel(%arg0: i32, %arg1: memref<32x24xf32, #tpu.memory_space<vmem>>, %arg2: memref<24x512xf32, #tpu.memory_space<vmem>>, %arg3: memref<1x512xf32, #tpu.memory_space<vmem>>, %arg4: memref<512x256xf32, #tpu.memory_space<vmem>>, %arg5: memref<1x256xf32, #tpu.memory_space<vmem>>, %arg6: memref<256x128xf32, #tpu.memory_space<vmem>>, %arg7: memref<1x128xf32, #tpu.memory_space<vmem>>, %arg8: memref<128x2xf32, #tpu.memory_space<vmem>>, %arg9: memref<1x2xf32, #tpu.memory_space<vmem>>, %arg10: memref<32x2xf32, #tpu.memory_space<vmem>>) attributes {dimension_semantics = [#tpu.dimension_semantics<parallel>], iteration_bounds = array<i64: 3>, scalar_prefetch = 0 : i64, scratch_operands = 0 : i64, tpu.core_type = #tpu.core_type<tc>, window_params = [{transform_indices = @transform_0, window_bounds = array<i64: 32, 24>}, {pipeline_mode = #tpu.pipeline_mode<synchronous>, transform_indices = @transform_1, window_bounds = array<i64: 24, 512>}, {pipeline_mode = #tpu.pipeline_mode<synchronous>, transform_indices = @transform_2, window_bounds = array<i64: 1, 512>}, {pipeline_mode = #tpu.pipeline_mode<synchronous>, transform_indices = @transform_3, window_bounds = array<i64: 512, 256>}, {pipeline_mode = #tpu.pipeline_mode<synchronous>, transform_indices = @transform_4, window_bounds = array<i64: 1, 256>}, {pipeline_mode = #tpu.pipeline_mode<synchronous>, transform_indices = @transform_5, window_bounds = array<i64: 256, 128>}, {pipeline_mode = #tpu.pipeline_mode<synchronous>, transform_indices = @transform_6, window_bounds = array<i64: 1, 128>}, {pipeline_mode = #tpu.pipeline_mode<synchronous>, transform_indices = @transform_7, window_bounds = array<i64: 128, 2>}, {pipeline_mode = #tpu.pipeline_mode<synchronous>, transform_indices = @transform_8, window_bounds = array<i64: 1, 2>}, {transform_indices = @transform_9, window_bounds = array<i64: 32, 2>}]} {
    %c0 = arith.constant 0 : index
    %c0_0 = arith.constant 0 : index
    %0 = vector.load %arg1[%c0, %c0_0] : memref<32x24xf32, #tpu.memory_space<vmem>>, vector<32x24xf32>
    %c0_1 = arith.constant 0 : index
    %c0_2 = arith.constant 0 : index
    %1 = vector.load %arg2[%c0_1, %c0_2] : memref<24x512xf32, #tpu.memory_space<vmem>>, vector<24x512xf32>
    %cst = arith.constant dense<0.000000e+00> : vector<32x512xf32>
    %2 = tpu.matmul %0, %1, %cst {dimension_numbers = #tpu.dot_dimension_numbers<[1], [0], [0], [1], [0, 0, 1, 1], [], []>} : vector<32x24xf32>, vector<24x512xf32>, vector<32x512xf32> -> vector<32x512xf32>
    %c0_3 = arith.constant 0 : index
    %c0_4 = arith.constant 0 : index
    %3 = vector.load %arg3[%c0_3, %c0_4] : memref<1x512xf32, #tpu.memory_space<vmem>>, vector<1x512xf32>
    %4 = vector.broadcast %3 : vector<1x512xf32> to vector<32x512xf32>
    %5 = arith.addf %2, %4 : vector<32x512xf32>
    %cst_5 = arith.constant 0.000000e+00 : f32
    %6 = vector.broadcast %cst_5 : f32 to vector<32x512xf32>
    %7 = arith.maximumf %5, %6 : vector<32x512xf32>
    %c0_6 = arith.constant 0 : index
    %c0_7 = arith.constant 0 : index
    %8 = vector.load %arg4[%c0_6, %c0_7] : memref<512x256xf32, #tpu.memory_space<vmem>>, vector<512x256xf32>
    %cst_8 = arith.constant dense<0.000000e+00> : vector<32x256xf32>
    %9 = tpu.matmul %7, %8, %cst_8 {dimension_numbers = #tpu.dot_dimension_numbers<[1], [0], [0], [1], [0, 0, 1, 1], [], []>} : vector<32x512xf32>, vector<512x256xf32>, vector<32x256xf32> -> vector<32x256xf32>
    %c0_9 = arith.constant 0 : index
    %c0_10 = arith.constant 0 : index
    %10 = vector.load %arg5[%c0_9, %c0_10] : memref<1x256xf32, #tpu.memory_space<vmem>>, vector<1x256xf32>
    %11 = vector.broadcast %10 : vector<1x256xf32> to vector<32x256xf32>
    %12 = arith.addf %9, %11 : vector<32x256xf32>
    %cst_11 = arith.constant 0.000000e+00 : f32
    %13 = vector.broadcast %cst_11 : f32 to vector<32x256xf32>
    %14 = arith.maximumf %12, %13 : vector<32x256xf32>
    %c0_12 = arith.constant 0 : index
    %c0_13 = arith.constant 0 : index
    %15 = vector.load %arg6[%c0_12, %c0_13] : memref<256x128xf32, #tpu.memory_space<vmem>>, vector<256x128xf32>
    %cst_14 = arith.constant dense<0.000000e+00> : vector<32x128xf32>
    %16 = tpu.matmul %14, %15, %cst_14 {dimension_numbers = #tpu.dot_dimension_numbers<[1], [0], [0], [1], [0, 0, 1, 1], [], []>} : vector<32x256xf32>, vector<256x128xf32>, vector<32x128xf32> -> vector<32x128xf32>
    %c0_15 = arith.constant 0 : index
    %c0_16 = arith.constant 0 : index
    %17 = vector.load %arg7[%c0_15, %c0_16] : memref<1x128xf32, #tpu.memory_space<vmem>>, vector<1x128xf32>
    %18 = vector.broadcast %17 : vector<1x128xf32> to vector<32x128xf32>
    %19 = arith.addf %16, %18 : vector<32x128xf32>
    %cst_17 = arith.constant 0.000000e+00 : f32
    %20 = vector.broadcast %cst_17 : f32 to vector<32x128xf32>
    %21 = arith.maximumf %19, %20 : vector<32x128xf32>
    %c0_18 = arith.constant 0 : index
    %c0_19 = arith.constant 0 : index
    %22 = vector.load %arg8[%c0_18, %c0_19] : memref<128x2xf32, #tpu.memory_space<vmem>>, vector<128x2xf32>
    %cst_20 = arith.constant dense<0.000000e+00> : vector<32x2xf32>
    %23 = tpu.matmul %21, %22, %cst_20 {dimension_numbers = #tpu.dot_dimension_numbers<[1], [0], [0], [1], [0, 0, 1, 1], [], []>} : vector<32x128xf32>, vector<128x2xf32>, vector<32x2xf32> -> vector<32x2xf32>
    %c0_21 = arith.constant 0 : index
    %c0_22 = arith.constant 0 : index
    %24 = vector.load %arg9[%c0_21, %c0_22] : memref<1x2xf32, #tpu.memory_space<vmem>>, vector<1x2xf32>
    %25 = vector.broadcast %24 : vector<1x2xf32> to vector<32x2xf32>
    %26 = arith.addf %23, %25 : vector<32x2xf32>
    %27 = math.tanh %26 : vector<32x2xf32>
    %c0_23 = arith.constant 0 : index
    %c0_24 = arith.constant 0 : index
    %28 = vector.load %arg10[%c0_23, %c0_24] : memref<32x2xf32, #tpu.memory_space<vmem>>, vector<32x2xf32>
    tpu.vector_store %arg10[%c0_23, %c0_24], %27 {strides = array<i32>} : memref<32x2xf32, #tpu.memory_space<vmem>>, vector<32x2xf32>,
    return
  }
  func.func @transform_0(%arg0: i32) -> (i32, i32) {
    %c0_i32 = arith.constant 0 : i32
    %c0_i32_0 = arith.constant 0 : i32
    return %arg0, %c0_i32 : i32, i32
  }
  func.func @transform_1(%arg0: i32) -> (i32, i32) {
    %c0_i32 = arith.constant 0 : i32
    %c0_i32_0 = arith.constant 0 : i32
    %c0_i32_1 = arith.constant 0 : i32
    return %c0_i32, %c0_i32_0 : i32, i32
  }
  func.func @transform_2(%arg0: i32) -> (i32, i32) {
    %c0_i32 = arith.constant 0 : i32
    %c0_i32_0 = arith.constant 0 : i32
    %c0_i32_1 = arith.constant 0 : i32
    return %c0_i32, %c0_i32_0 : i32, i32
  }
  func.func @transform_3(%arg0: i32) -> (i32, i32) {
    %c0_i32 = arith.constant 0 : i32
    %c0_i32_0 = arith.constant 0 : i32
    %c0_i32_1 = arith.constant 0 : i32
    return %c0_i32, %c0_i32_0 : i32, i32
  }
  func.func @transform_4(%arg0: i32) -> (i32, i32) {
    %c0_i32 = arith.constant 0 : i32
    %c0_i32_0 = arith.constant 0 : i32
    %c0_i32_1 = arith.constant 0 : i32
    return %c0_i32, %c0_i32_0 : i32, i32
  }
  func.func @transform_5(%arg0: i32) -> (i32, i32) {
    %c0_i32 = arith.constant 0 : i32
    %c0_i32_0 = arith.constant 0 : i32
    %c0_i32_1 = arith.constant 0 : i32
    return %c0_i32, %c0_i32_0 : i32, i32
  }
  func.func @transform_6(%arg0: i32) -> (i32, i32) {
    %c0_i32 = arith.constant 0 : i32
    %c0_i32_0 = arith.constant 0 : i32
    %c0_i32_1 = arith.constant 0 : i32
    return %c0_i32, %c0_i32_0 : i32, i32
  }
  func.func @transform_7(%arg0: i32) -> (i32, i32) {
    %c0_i32 = arith.constant 0 : i32
    %c0_i32_0 = arith.constant 0 : i32
    %c0_i32_1 = arith.constant 0 : i32
    return %c0_i32, %c0_i32_0 : i32, i32
  }
  func.func @transform_8(%arg0: i32) -> (i32, i32) {
    %c0_i32 = arith.constant 0 : i32
    %c0_i32_0 = arith.constant 0 : i32
    %c0_i32_1 = arith.constant 0 : i32
    return %c0_i32, %c0_i32_0 : i32, i32
  }
  func.func @transform_9(%arg0: i32) -> (i32, i32) {
    %c0_i32 = arith.constant 0 : i32
    %c0_i32_0 = arith.constant 0 : i32
    return %arg0, %c0_i32 : i32, i32
  }
}

</mosaic_0001>

<bundles_post_ra>
// kernel: tpu_custom_call.1
= control target key start
LH: loop header
LB: loop body
LE: loop exit
PB: predicated region body
PF: predicated region fallthrough
CT: control target
= control target key end

     0   :  { %14 = vsyncpa [#allocation3], 0  ;;  %s1611_s0 = inlined_call_operand.vmem [shape: f32[90,24], index: 0, kind: input, shape index: {}]   ;;  %s1612_s1 = inlined_call_operand.vmem [shape: f32[24,512], index: 1, kind: input, shape index: {}]   ;;  %s1613_s2 = inlined_call_operand.vmem [shape: f32[1,512], index: 2, kind: input, shape index: {}]   ;;  %s1614_s3 = inlined_call_operand.hbm [shape: f32[512,256], index: 3, kind: input, shape index: {}]   ;;  %s1615_s4 = inlined_call_operand.vmem [shape: f32[1,256], index: 4, kind: input, shape index: {}]   ;;  %s1616_s5 = inlined_call_operand.hbm [shape: f32[256,128], index: 5, kind: input, shape index: {}]   ;;  %s1617_s6 = inlined_call_operand.vmem [shape: f32[1,128], index: 6, kind: input, shape index: {}]   ;;  %s1618_s7 = inlined_call_operand.vmem [shape: f32[128,2], index: 7, kind: input, shape index: {}]   ;;  %s1619_s8 = inlined_call_operand.vmem [shape: f32[1,2], index: 8, kind: input, shape index: {}]   ;;  %s1620_s9 = inlined_call_operand.vmem [shape: f32[90,2], index: 9, kind: output, shape index: {}]  }
   0x1   :  { %15 = vsyncpa [#allocation5], 0  ;;  %s1371_s30 = smov 0  }
   0x2 LB: > { %s263_s12 = sshll.u32 %s1614_s3, 4  ;;  %s1149_s13 = sadd.s32 4294967295, %s1313_s30   ;;  %s1313_s30 = sphi %s1371_s30, %s21_s30   ;;  %s264_s12 = int_to_ptr.hbm [resolvable:$true] %s263_s12 }
   0x3   : > { %p1151_p0 = scmp.ge.s32.totalorder %s1313_s30, 1  ;;  %p246_p1 = scmp.lt.s32.totalorder %s1313_s30, 4 }
   0x4   : > { %p1382_p2 = scmp.eq.s32.totalorder %s1149_s13, 0  ;;  %s1315_s16 = smov [#allocation2]  }
   0x5   : > { %p1386_p3 = pnand %p1151_p0, %p246_p1  ;;  %s265_s17 = sshll.u32 %s1315_s16, 4  ;;  %s266_s17 = int_to_ptr.vmem [resolvable:$true] %s265_s17 }
   0x6   : > { %s280_s20 = sshll.u32 %s1616_s5, 4  ;;  %s1316_s21 = smov [#allocation4]   ;;  %s281_s20 = int_to_ptr.hbm [resolvable:$true] %s280_s20 }
   0x7   : > { %p1204_p4 = pneg %p1386_p3  ;;  %s282_s22 = sshll.u32 %s1316_s21, 4  ;;  %s283_s22 = int_to_ptr.vmem [resolvable:$true] %s282_s22 }
   0x8   : > { %s1317_s23 = smov 256   ;;  %s1318_s24 = smov 16  }
   0x9   : > { %p1205_p5 = pnand %p1382_p2, %p1204_p4  ;;  %s1319_s25 = smov 128  }
   0xa   : > { %s1320_s26 = smov 8   ;;  %316 = sbr.rel (%p1386_p3) target bundleno = 628 (0x274), region = 56 }
   0xb   : > { %1207 = dma.hbm_to_vmem [thread:$0]  (!%p1205_p5), %s264_s12, 16384, %s266_s17, [#allocation3], %s1317_s23, %s1317_s23, %s1318_s24  }
   0xc   : > { %1210 = dma.hbm_to_vmem [thread:$0]  (!%p1205_p5), %s281_s20, 4096, %s283_s22, [#allocation5], %s1319_s25, %s1319_s25, %s1320_s26  }
   0xf   : > { %1304 = dma.done.wait (%p1382_p2), [#allocation3], 16384  }
  0x10   : > { %1306 = vsyncadd (%p1382_p2), [#allocation3], 4294950912 }
  0x11   : > { %1308 = dma.done.wait (%p1382_p2), [#allocation5], 4096  }
  0x12   : > { %1310 = vsyncadd (%p1382_p2), [#allocation5], 4294963200  ;;  %s1158_s27 = sshll.u32 %s1149_s13, 2  ;;  %v382_v0 = vld [vmem:[%s1612_s1 + $0x40] sm:$0xff]  ;;  %v383_v1 = vld [vmem:[%s1612_s1 + $0x48] sm:$0xff]  ;;  %vm396_vm0 = vcmask 195584  }
  0x13   : > { %p359_p6 = scmp.lt.s32.totalorder %s1158_s27, 11  ;;  %v384_v2 = vld [vmem:[%s1612_s1 + $0x50] sm:$0xff]  ;;  %422 = vmatpush.msra.mxu0 %v382_v0  ;;  %451 = vmatpush.msra.mxu1 %v383_v1  ;;  %v385_v3 = vld [vmem:[%s1612_s1 + $0x58] sm:$0xff]  ;;  %v378_v4 = vld [vmem:[%s1612_s1 + $0x20] sm:$0xff]  ;;  %vm1066_vm1 = vcmask 15360  }
  0x14   : > { %v379_v5 = vld [vmem:[%s1612_s1 + $0x28] sm:$0xff]  ;;  %480 = vmatpush.msra.mxu2 %v384_v2  ;;  %509 = vmatpush.msra.mxu3 %v385_v3  ;;  %v380_v6 = vld [vmem:[%s1612_s1 + $0x30] sm:$0xff]  ;;  %v381_v7 = vld [vmem:[%s1612_s1 + $0x38] sm:$0xff] }
  0x15   : > { %s1624_s27 = smov (!%p359_p6, %s1158_s27), 11  ;;  %v374_v8 = vld [vmem:[%s1612_s1] sm:$0xff]  ;;  %423 = vmatpush.msra.mxu0 %v378_v4  ;;  %452 = vmatpush.msra.mxu1 %v379_v5  ;;  %v375_v9 = vld [vmem:[%s1612_s1 + $0x8] sm:$0xff]  ;;  %v376_v10 = vld [vmem:[%s1612_s1 + $0x10] sm:$0xff] }
  0x16   : > { %s1159_s28 = sshll.u32 %s1624_s27, 3  ;;  %v377_v11 = vld [vmem:[%s1612_s1 + $0x18] sm:$0xff]  ;;  %481 = vmatpush.msra.mxu2 %v380_v6  ;;  %510 = vmatpush.msra.mxu3 %v381_v7  ;;  %v571_v13 = vld [vmem:[#allocation2 + $0xf0] sm:$0xff]  ;;  %v569_v16 = vld [vmem:[#allocation2 + $0xe0] sm:$0xff] }
  0x17   : > { %s1433_s23 = scalar_lea.vmem %s1611_s0, %s1159_s28  ;;  %424 = vmatpush.msra.mxu0 %v374_v8  ;;  %453 = vmatpush.msra.mxu1 %v375_v9  ;;  %v603_v14 = vld [vmem:[#allocation2 + $0x1f0] sm:$0xff]  ;;  %v601_v17 = vld [vmem:[#allocation2 + $0x1e0] sm:$0xff]  ;;  %s368_s24 = scalar_lea.vmem %s1620_s9, %s1159_s28 }
  0x18   : > { %v370_v12 = vld [vmem:[%s1433_s23] sm:$0xff]  ;;  %482 = vmatpush.msra.mxu2 %v376_v10  ;;  %511 = vmatpush.msra.mxu3 %v377_v11  ;;  %v635_v15 = vld [vmem:[#allocation2 + $0x2f0] sm:$0xff]  ;;  %v371_v25 = vld [vmem:[%s1433_s23 + $0x8] sm:$0xff] }
  0x19   : > { %1162 = vmatmul.msk.f32.vlgmr.msra.gmra.mxu0 %vm396_vm0, %v370_v12  ;;  %1166 = vmatmul.msk.f32.vlgmr.msra.gmra.mxu1 %vm396_vm0, %v370_v12  ;;  %v667_v18 = vld [vmem:[#allocation2 + $0x3f0] sm:$0xff]  ;;  %v633_v19 = vld [vmem:[#allocation2 + $0x2e0] sm:$0xff]  ;;  %v373_v51 = vld [vmem:[%s1433_s23 + $0x18] sm:$0xff] }
  0x1a   : > { %1170 = vmatmul.msk.f32.vlgmr.msra.gmra.mxu2 %vm396_vm0, %v370_v12  ;;  %1174 = vmatmul.msk.f32.vlgmr.msra.gmra.mxu3 %vm396_vm0, %v370_v12  ;;  %v665_v20 = vld [vmem:[#allocation2 + $0x3e0] sm:$0xff]  ;;  %v567_v21 = vld [vmem:[#allocation2 + $0xd0] sm:$0xff]  ;;  %v572_v12 = vld [vmem:[#allocation2 + $0xf8] sm:$0xff] }
  0x1b   : > { %675 = vmatpush.msrb.mxu0 %v571_v13  ;;  %704 = vmatpush.msrb.mxu1 %v603_v14  ;;  %v599_v22 = vld [vmem:[#allocation2 + $0x1d0] sm:$0xff]  ;;  %v565_v26 = vld [vmem:[#allocation2 + $0xc0] sm:$0xff]  ;;  %v604_v13 = vld [vmem:[#allocation2 + $0x1f8] sm:$0xff] }
  0x1c   : > { %733 = vmatpush.msrb.mxu2 %v635_v15  ;;  %762 = vmatpush.msrb.mxu3 %v667_v18  ;;  %v631_v23 = vld [vmem:[#allocation2 + $0x2d0] sm:$0xff]  ;;  %v597_v27 = vld [vmem:[#allocation2 + $0x1c0] sm:$0xff] }
  0x1d   : > { %676 = vmatpush.msrb.mxu0 %v569_v16  ;;  %705 = vmatpush.msrb.mxu1 %v601_v17  ;;  %v663_v24 = vld [vmem:[#allocation2 + $0x3d0] sm:$0xff]  ;;  %v629_v28 = vld [vmem:[#allocation2 + $0x2c0] sm:$0xff]  ;;  %v570_v16 = vld [vmem:[#allocation2 + $0xe8] sm:$0xff] }
  0x1e   : > { %734 = vmatpush.msrb.mxu2 %v633_v19  ;;  %763 = vmatpush.msrb.mxu3 %v665_v20  ;;  %v661_v29 = vld [vmem:[#allocation2 + $0x3c0] sm:$0xff]  ;;  %v563_v30 = vld [vmem:[#allocation2 + $0xb0] sm:$0xff]  ;;  %v602_v17 = vld [vmem:[#allocation2 + $0x1e8] sm:$0xff] }
  0x1f   : > { %677 = vmatpush.msrb.mxu0 %v567_v21  ;;  %706 = vmatpush.msrb.mxu1 %v599_v22  ;;  %v595_v31 = vld [vmem:[#allocation2 + $0x1b0] sm:$0xff]  ;;  %v561_v34 = vld [vmem:[#allocation2 + $0xa0] sm:$0xff]  ;;  %v568_v20 = vld [vmem:[#allocation2 + $0xd8] sm:$0xff] }
  0x20   : > { %735 = vmatpush.msrb.mxu2 %v631_v23  ;;  %764 = vmatpush.msrb.mxu3 %v663_v24  ;;  %v627_v32 = vld [vmem:[#allocation2 + $0x2b0] sm:$0xff]  ;;  %v593_v35 = vld [vmem:[#allocation2 + $0x1a0] sm:$0xff]  ;;  %v600_v21 = vld [vmem:[#allocation2 + $0x1d8] sm:$0xff] }
  0x21   : > { %1163 = vmatmul.msk.f32.gmra.mxu0 %vm396_vm0, %v371_v25  ;;  %1167 = vmatmul.msk.f32.gmra.mxu1 %vm396_vm0, %v371_v25  ;;  %v659_v33 = vld [vmem:[#allocation2 + $0x3b0] sm:$0xff]  ;;  %v625_v36 = vld [vmem:[#allocation2 + $0x2a0] sm:$0xff]  ;;  %v636_v22 = vld [vmem:[#allocation2 + $0x2f8] sm:$0xff] }
  0x22   : > { %1171 = vmatmul.msk.f32.gmra.mxu2 %vm396_vm0, %v371_v25  ;;  %1175 = vmatmul.msk.f32.gmra.mxu3 %vm396_vm0, %v371_v25  ;;  %v657_v37 = vld [vmem:[#allocation2 + $0x3a0] sm:$0xff]  ;;  %v372_v38 = vld [vmem:[%s1433_s23 + $0x10] sm:$0xff]  ;;  %v566_v23 = vld [vmem:[#allocation2 + $0xc8] sm:$0xff] }
  0x23   : > { %678 = vmatpush.msrb.mxu0 %v565_v26  ;;  %707 = vmatpush.msrb.mxu1 %v597_v27  ;;  %v559_v39 = vld [vmem:[#allocation2 + $0x90] sm:$0xff]  ;;  %v557_v43 = vld [vmem:[#allocation2 + $0x80] sm:$0xff]  ;;  %v598_v24 = vld [vmem:[#allocation2 + $0x1c8] sm:$0xff] }
  0x24   : > { %736 = vmatpush.msrb.mxu2 %v629_v28  ;;  %765 = vmatpush.msrb.mxu3 %v661_v29  ;;  %v591_v40 = vld [vmem:[#allocation2 + $0x190] sm:$0xff]  ;;  %v589_v44 = vld [vmem:[#allocation2 + $0x180] sm:$0xff]  ;;  %v668_v25 = vld [vmem:[#allocation2 + $0x3f8] sm:$0xff] }
  0x25   : > { %679 = vmatpush.msrb.mxu0 %v563_v30  ;;  %708 = vmatpush.msrb.mxu1 %v595_v31  ;;  %v623_v41 = vld [vmem:[#allocation2 + $0x290] sm:$0xff]  ;;  %v621_v45 = vld [vmem:[#allocation2 + $0x280] sm:$0xff]  ;;  %v634_v26 = vld [vmem:[#allocation2 + $0x2e8] sm:$0xff] }
  0x26   : > { %737 = vmatpush.msrb.mxu2 %v627_v32  ;;  %766 = vmatpush.msrb.mxu3 %v659_v33  ;;  %v655_v42 = vld [vmem:[#allocation2 + $0x390] sm:$0xff]  ;;  %v653_v46 = vld [vmem:[#allocation2 + $0x380] sm:$0xff]  ;;  %v564_v27 = vld [vmem:[#allocation2 + $0xb8] sm:$0xff] }
  0x27   : > { %680 = vmatpush.msrb.mxu0 %v561_v34  ;;  %709 = vmatpush.msrb.mxu1 %v593_v35  ;;  %v555_v47 = vld [vmem:[#allocation2 + $0x70] sm:$0xff]  ;;  %v553_v52 = vld [vmem:[#allocation2 + $0x60] sm:$0xff]  ;;  %v596_v28 = vld [vmem:[#allocation2 + $0x1b8] sm:$0xff] }
  0x28   : > { %738 = vmatpush.msrb.mxu2 %v625_v36  ;;  %767 = vmatpush.msrb.mxu3 %v657_v37  ;;  %v587_v48 = vld [vmem:[#allocation2 + $0x170] sm:$0xff]  ;;  %v585_v53 = vld [vmem:[#allocation2 + $0x160] sm:$0xff]  ;;  %v666_v29 = vld [vmem:[#allocation2 + $0x3e8] sm:$0xff] }
  0x29   : > { %1164 = vmatmul.msk.f32.gmra.mxu0 %vm396_vm0, %v372_v38  ;;  %1168 = vmatmul.msk.f32.gmra.mxu1 %vm396_vm0, %v372_v38  ;;  %v619_v49 = vld [vmem:[#allocation2 + $0x270] sm:$0xff]  ;;  %v617_v54 = vld [vmem:[#allocation2 + $0x260] sm:$0xff]  ;;  %v632_v30 = vld [vmem:[#allocation2 + $0x2d8] sm:$0xff] }
  0x2a   : > { %1172 = vmatmul.msk.f32.gmra.mxu2 %vm396_vm0, %v372_v38  ;;  %1176 = vmatmul.msk.f32.gmra.mxu3 %vm396_vm0, %v372_v38  ;;  %v651_v50 = vld [vmem:[#allocation2 + $0x370] sm:$0xff]  ;;  %v649_v55 = vld [vmem:[#allocation2 + $0x360] sm:$0xff]  ;;  %v562_v31 = vld [vmem:[#allocation2 + $0xa8] sm:$0xff] }
  0x2b   : > { %681 = vmatpush.msrb.mxu0 %v559_v39  ;;  %710 = vmatpush.msrb.mxu1 %v591_v40  ;;  %v551_v56 = vld [vmem:[#allocation2 + $0x50] sm:$0xff]  ;;  %v549_v59 = vld [vmem:[#allocation2 + $0x40] sm:$0xff]  ;;  %v594_v32 = vld [vmem:[#allocation2 + $0x1a8] sm:$0xff] }
  0x2c   : > { %739 = vmatpush.msrb.mxu2 %v623_v41  ;;  %768 = vmatpush.msrb.mxu3 %v655_v42  ;;  %v583_v57 = vld [vmem:[#allocation2 + $0x150] sm:$0xff]  ;;  %v581_v60 = vld [vmem:[#allocation2 + $0x140] sm:$0xff]  ;;  %v664_v33 = vld [vmem:[#allocation2 + $0x3d8] sm:$0xff] }
  0x2d   : > { %682 = vmatpush.msrb.mxu0 %v557_v43  ;;  %711 = vmatpush.msrb.mxu1 %v589_v44  ;;  %v615_v58 = vld [vmem:[#allocation2 + $0x250] sm:$0xff]  ;;  %v545_v63 = vld [vmem:[#allocation2 + $0x20] sm:$0xff]  ;;  %v630_v34 = vld [vmem:[#allocation2 + $0x2c8] sm:$0xff] }
  0x2e   : > { %740 = vmatpush.msrb.mxu2 %v621_v45  ;;  %769 = vmatpush.msrb.mxu3 %v653_v46  ;;  %v547_v61 = vld [vmem:[#allocation2 + $0x30] sm:$0xff]  ;;  %v577_v0 = vld [vmem:[#allocation2 + $0x120] sm:$0xff]  ;;  %v560_v35 = vld [vmem:[#allocation2 + $0x98] sm:$0xff] }
  0x2f   : > { %683 = vmatpush.msrb.mxu0 %v555_v47  ;;  %712 = vmatpush.msrb.mxu1 %v587_v48  ;;  %v579_v62 = vld [vmem:[#allocation2 + $0x130] sm:$0xff]  ;;  %v613_v2 = vld [vmem:[#allocation2 + $0x240] sm:$0xff]  ;;  %v592_v36 = vld [vmem:[#allocation2 + $0x198] sm:$0xff] }
  0x30   : > { %741 = vmatpush.msrb.mxu2 %v619_v49  ;;  %770 = vmatpush.msrb.mxu3 %v651_v50  ;;  %v647_v1 = vld [vmem:[#allocation2 + $0x350] sm:$0xff]  ;;  %v645_v5 = vld [vmem:[#allocation2 + $0x340] sm:$0xff]  ;;  %v662_v37 = vld [vmem:[#allocation2 + $0x3c8] sm:$0xff] }
  0x31   : > { %1165 = vmatmul.msk.f32.gmra.mxu0 %vm396_vm0, %v373_v51  ;;  %1169 = vmatmul.msk.f32.gmra.mxu1 %vm396_vm0, %v373_v51  ;;  %v543_v3 = vld [vmem:[#allocation2 + $0x10] sm:$0xff]  ;;  %v541_v7 = vld [vmem:[#allocation2] sm:$0xff]  ;;  %v628_v38 = vld [vmem:[#allocation2 + $0x2b8] sm:$0xff] }
  0x32   : > { %1173 = vmatmul.msk.f32.gmra.mxu2 %vm396_vm0, %v373_v51  ;;  %1177 = vmatmul.msk.f32.gmra.mxu3 %vm396_vm0, %v373_v51  ;;  %v575_v4 = vld [vmem:[#allocation2 + $0x110] sm:$0xff]  ;;  %v573_v8 = vld [vmem:[#allocation2 + $0x100] sm:$0xff]  ;;  %v558_v39 = vld [vmem:[#allocation2 + $0x88] sm:$0xff] }
  0x33   : > { %684 = vmatpush.msrb.mxu0 %v553_v52  ;;  %713 = vmatpush.msrb.mxu1 %v585_v53  ;;  %v611_v6 = vld [vmem:[#allocation2 + $0x230] sm:$0xff]  ;;  %v609_v10 = vld [vmem:[#allocation2 + $0x220] sm:$0xff]  ;;  %v590_v40 = vld [vmem:[#allocation2 + $0x188] sm:$0xff] }
  0x34   : > { %742 = vmatpush.msrb.mxu2 %v617_v54  ;;  %771 = vmatpush.msrb.mxu3 %v649_v55  ;;  %v643_v9 = vld [vmem:[#allocation2 + $0x330] sm:$0xff]  ;;  %v641_v11 = vld [vmem:[#allocation2 + $0x320] sm:$0xff]  ;;  %v660_v41 = vld [vmem:[#allocation2 + $0x3b8] sm:$0xff] }
  0x35   : > { %685 = vmatpush.msrb.mxu0 %v551_v56  ;;  %714 = vmatpush.msrb.mxu1 %v583_v57  ;;  %v607_v14 = vld [vmem:[#allocation2 + $0x210] sm:$0xff]  ;;  %v605_v18 = vld [vmem:[#allocation2 + $0x200] sm:$0xff]  ;;  %v626_v42 = vld [vmem:[#allocation2 + $0x2a8] sm:$0xff] }
  0x36   : > { %743 = vmatpush.msrb.mxu2 %v615_v58  ;;  %772 = vmatpush.msrb.mxu3 %v647_v1  ;;  %v639_v15 = vld [vmem:[#allocation2 + $0x310] sm:$0xff]  ;;  %v637_v19 = vld [vmem:[#allocation2 + $0x300] sm:$0xff]  ;;  %v556_v43 = vld [vmem:[#allocation2 + $0x78] sm:$0xff] }
  0x37   : > { %686 = vmatpush.msrb.mxu0 %v549_v59  ;;  %715 = vmatpush.msrb.mxu1 %v581_v60  ;;  %v588_v44 = vld [vmem:[#allocation2 + $0x178] sm:$0xff]  ;;  %v658_v45 = vld [vmem:[#allocation2 + $0x3a8] sm:$0xff]  ;;  %v386_v49 = vld [vmem:[%s1613_s2] sm:$0xf] }
  0x38   : > { %744 = vmatpush.msrb.mxu2 %v613_v2  ;;  %773 = vmatpush.msrb.mxu3 %v645_v5  ;;  %v624_v46 = vld [vmem:[#allocation2 + $0x298] sm:$0xff]  ;;  %v554_v47 = vld [vmem:[#allocation2 + $0x68] sm:$0xff]  ;;  %v1476_v58 = vperm.slane %v386_v49, 0  ;;  %v1478_v59 = vperm.slane %v386_v49, 1 }
  0x39   : > { %687 = vmatpush.msrb.mxu0 %v547_v61  ;;  %716 = vmatpush.msrb.mxu1 %v579_v62  ;;  %v586_v48 = vld [vmem:[#allocation2 + $0x168] sm:$0xff]  ;;  %v656_v50 = vld [vmem:[#allocation2 + $0x398] sm:$0xff] }
  0x3a   : > { %745 = vmatpush.msrb.mxu2 %v611_v6  ;;  %774 = vmatpush.msrb.mxu3 %v643_v9  ;;  %v622_v51 = vld [vmem:[#allocation2 + $0x288] sm:$0xff]  ;;  %v552_v52 = vld [vmem:[#allocation2 + $0x58] sm:$0xff] }
  0x3b   : > { %688 = vmatpush.msrb.mxu0 %v545_v63  ;;  %717 = vmatpush.msrb.mxu1 %v577_v0  ;;  %v584_v53 = vld [vmem:[#allocation2 + $0x158] sm:$0xff]  ;;  %v654_v54 = vld [vmem:[#allocation2 + $0x388] sm:$0xff] }
  0x3c   : > { %746 = vmatpush.msrb.mxu2 %v609_v10  ;;  %775 = vmatpush.msrb.mxu3 %v641_v11  ;;  %v620_v55 = vld [vmem:[#allocation2 + $0x278] sm:$0xff]  ;;  %v550_v56 = vld [vmem:[#allocation2 + $0x48] sm:$0xff] }
  0x3d   : > { %689 = vmatpush.msrb.mxu0 %v543_v3  ;;  %718 = vmatpush.msrb.mxu1 %v575_v4  ;;  %v582_v57 = vld [vmem:[#allocation2 + $0x148] sm:$0xff]  ;;  %v652_v60 = vld [vmem:[#allocation2 + $0x378] sm:$0xff] }
  0x3e   : > { %747 = vmatpush.msrb.mxu2 %v607_v14  ;;  %776 = vmatpush.msrb.mxu3 %v639_v15  ;;  %v618_v61 = vld [vmem:[#allocation2 + $0x268] sm:$0xff]  ;;  %v548_v62 = vld [vmem:[#allocation2 + $0x38] sm:$0xff]  ;;  %v1488_v15 = vperm.slane %v386_v49, 2 }
  0x3f   : > { %690 = vmatpush.msrb.mxu0 %v541_v7  ;;  %719 = vmatpush.msrb.mxu1 %v573_v8  ;;  %v580_v63 = vld [vmem:[#allocation2 + $0x138] sm:$0xff]  ;;  %v650_v0 = vld [vmem:[#allocation2 + $0x368] sm:$0xff] }
  0x40   : > { %748 = vmatpush.msrb.mxu2 %v605_v18  ;;  %777 = vmatpush.msrb.mxu3 %v637_v19  ;;  %v616_v3 = vld [vmem:[#allocation2 + $0x258] sm:$0xff]  ;;  %v546_v4 = vld [vmem:[#allocation2 + $0x28] sm:$0xff] }
  0x41   : > { %791 = vmatpush.msra.mxu0 %v572_v12  ;;  %820 = vmatpush.msra.mxu1 %v604_v13  ;;  %v578_v5 = vld [vmem:[#allocation2 + $0x128] sm:$0xff]  ;;  %v648_v8 = vld [vmem:[#allocation2 + $0x358] sm:$0xff] }
  0x42   : > { %849 = vmatpush.msra.mxu2 %v636_v22  ;;  %878 = vmatpush.msra.mxu3 %v668_v25  ;;  %v614_v9 = vld [vmem:[#allocation2 + $0x248] sm:$0xff]  ;;  %v544_v10 = vld [vmem:[#allocation2 + $0x18] sm:$0xff] }
  0x43   : > { %792 = vmatpush.msra.mxu0 %v570_v16  ;;  %821 = vmatpush.msra.mxu1 %v602_v17  ;;  %v576_v11 = vld [vmem:[#allocation2 + $0x118] sm:$0xff]  ;;  %v646_v14 = vld [vmem:[#allocation2 + $0x348] sm:$0xff]  ;;  %v1490_v16 = vperm.slane %v386_v49, 3 }
  0x44   : > { %850 = vmatpush.msra.mxu2 %v634_v26  ;;  %879 = vmatpush.msra.mxu3 %v666_v29  ;;  %v612_v17 = vld [vmem:[#allocation2 + $0x238] sm:$0xff]  ;;  %v542_v18 = vld [vmem:[#allocation2 + $0x8] sm:$0xff] }
  0x45   : > { %793 = vmatpush.msra.mxu0 %v568_v20  ;;  %822 = vmatpush.msra.mxu1 %v600_v21  ;;  %v574_v19 = vld [vmem:[#allocation2 + $0x108] sm:$0xff]  ;;  %v644_v20 = vld [vmem:[#allocation2 + $0x338] sm:$0xff] }
  0x46   : > { %851 = vmatpush.msra.mxu2 %v632_v30  ;;  %880 = vmatpush.msra.mxu3 %v664_v33  ;;  %v610_v21 = vld [vmem:[#allocation2 + $0x228] sm:$0xff]  ;;  %v608_v25 = vld [vmem:[#allocation2 + $0x218] sm:$0xff] }
  0x47   : > { %794 = vmatpush.msra.mxu0 %v566_v23  ;;  %823 = vmatpush.msra.mxu1 %v598_v24  ;;  %v642_v22 = vld [vmem:[#allocation2 + $0x328] sm:$0xff]  ;;  %v640_v30 = vld [vmem:[#allocation2 + $0x318] sm:$0xff] }
  0x48   : > { %852 = vmatpush.msra.mxu2 %v630_v34  ;;  %881 = vmatpush.msra.mxu3 %v662_v37  ;;  %v606_v37 = vld [vmem:[#allocation2 + $0x208] sm:$0xff] }
  0x49   : > { %795 = vmatpush.msra.mxu0 %v564_v27  ;;  %824 = vmatpush.msra.mxu1 %v596_v28 }
  0x4a   : > { %853 = vmatpush.msra.mxu2 %v628_v38  ;;  %882 = vmatpush.msra.mxu3 %v660_v41  ;;  %v638_v38 = vld [vmem:[#allocation2 + $0x308] sm:$0xff] }
  0x4b   : > { %796 = vmatpush.msra.mxu0 %v562_v31  ;;  %825 = vmatpush.msra.mxu1 %v594_v32 }
  0x4c   : > { %854 = vmatpush.msra.mxu2 %v626_v42  ;;  %883 = vmatpush.msra.mxu3 %v658_v45 }
  0x4d   : > { %797 = vmatpush.msra.mxu0 %v560_v35  ;;  %826 = vmatpush.msra.mxu1 %v592_v36 }
  0x4e   : > { %855 = vmatpush.msra.mxu2 %v624_v46  ;;  %884 = vmatpush.msra.mxu3 %v656_v50 }
  0x4f   : > { %798 = vmatpush.msra.mxu0 %v558_v39  ;;  %827 = vmatpush.msra.mxu1 %v590_v40 }
  0x50   : > { %856 = vmatpush.msra.mxu2 %v622_v51  ;;  %885 = vmatpush.msra.mxu3 %v654_v54 }
  0x51   : > { %799 = vmatpush.msra.mxu0 %v556_v43  ;;  %828 = vmatpush.msra.mxu1 %v588_v44 }
  0x52   : > { %857 = vmatpush.msra.mxu2 %v620_v55  ;;  %886 = vmatpush.msra.mxu3 %v652_v60 }
  0x53   : > { %800 = vmatpush.msra.mxu0 %v554_v47  ;;  %829 = vmatpush.msra.mxu1 %v586_v48 }
  0x54   : > { %858 = vmatpush.msra.mxu2 %v618_v61  ;;  %887 = vmatpush.msra.mxu3 %v650_v0 }
  0x55   : > { %801 = vmatpush.msra.mxu0 %v552_v52  ;;  %830 = vmatpush.msra.mxu1 %v584_v53 }
  0x56   : > { %859 = vmatpush.msra.mxu2 %v616_v3  ;;  %888 = vmatpush.msra.mxu3 %v648_v8 }
  0x57   : > { %802 = vmatpush.msra.mxu0 %v550_v56  ;;  %831 = vmatpush.msra.mxu1 %v582_v57 }
  0x58   : > { %860 = vmatpush.msra.mxu2 %v614_v9  ;;  %889 = vmatpush.msra.mxu3 %v646_v14  ;;  %v928_v9 = vld [vmem:[#allocation4 + $0x68] sm:$0xff]  ;;  %v921_v14 = vld [vmem:[#allocation4 + $0x30] sm:$0xff] }
  0x59   : > { %803 = vmatpush.msra.mxu0 %v548_v62  ;;  %832 = vmatpush.msra.mxu1 %v580_v63 }
  0x5a   : > { %861 = vmatpush.msra.mxu2 %v612_v17  ;;  %890 = vmatpush.msra.mxu3 %v644_v20  ;;  %v918_v17 = vld [vmem:[#allocation4 + $0x18] sm:$0xff]  ;;  %v915_v20 = vld [vmem:[#allocation4] sm:$0xff] }
  0x5b   : > { %804 = vmatpush.msra.mxu0 %v546_v4  ;;  %833 = vmatpush.msra.mxu1 %v578_v5 }
  0x5c   : > { %862 = vmatpush.msra.mxu2 %v610_v21  ;;  %891 = vmatpush.msra.mxu3 %v642_v22  ;;  %v946_v21 = vld [vmem:[#allocation4 + $0xf8] sm:$0xff]  ;;  %v945_v22 = vld [vmem:[#allocation4 + $0xf0] sm:$0xff] }
  0x5d   : > { %805 = vmatpush.msra.mxu0 %v544_v10  ;;  %834 = vmatpush.msra.mxu1 %v576_v11  ;;  %v927_v10 = vld [vmem:[#allocation4 + $0x60] sm:$0xff]  ;;  %v924_v11 = vld [vmem:[#allocation4 + $0x48] sm:$0xff] }
  0x5e   : > { %863 = vmatpush.msra.mxu2 %v608_v25  ;;  %892 = vmatpush.msra.mxu3 %v640_v30  ;;  %v942_v25 = vld [vmem:[#allocation4 + $0xd8] sm:$0xff]  ;;  %v940_v30 = vld [vmem:[#allocation4 + $0xc8] sm:$0xff] }
  0x5f   : > { %806 = vmatpush.msra.mxu0 %v542_v18  ;;  %835 = vmatpush.msra.mxu1 %v574_v19  ;;  %v917_v18 = vld [vmem:[#allocation4 + $0x10] sm:$0xff]  ;;  %v916_v19 = vld [vmem:[#allocation4 + $0x8] sm:$0xff] }
  0x60   : > { %864 = vmatpush.msra.mxu2 %v606_v37  ;;  %893 = vmatpush.msra.mxu3 %v638_v38  ;;  %v936_v38 = vld [vmem:[#allocation4 + $0xa8] sm:$0xff] }
  0x96   : > { %v426_v1 = vpop.f32.mrf.mxu0  ;;  %v455_v2 = vpop.f32.mrf.mxu1 }
  0x97   : > { %v1481_v6 = vadd.f32 %v426_v1, %v1476_v58  ;;  %v1484_v7 = vadd.f32 %v455_v2, %v1478_v59 }
  0x99   : > { %v525_v12 = vmax.f32 %v1481_v6, 0.0  ;;  %v526_v13 = vmax.f32 %v1484_v7, 0.0  ;;  %v926_v6 = vld [vmem:[#allocation4 + $0x58] sm:$0xff]  ;;  %v925_v7 = vld [vmem:[#allocation4 + $0x50] sm:$0xff] }
  0x9b   : > { %691 = vmatmul.f32.vlgmr.msrb.gmra.mxu0 %v525_v12  ;;  %720 = vmatmul.f32.vlgmr.msrb.gmra.mxu1 %v526_v13 }
  0x9c   : > { %980 = vmatpush.msrb.mxu1 %v946_v21 }
  0x9d   : > { %v484_v23 = vpop.f32.mrf.mxu2  ;;  %v513_v24 = vpop.f32.mrf.mxu3 }
  0x9e   : > { %v1497_v26 = vadd.f32 %v484_v23, %v1488_v15  ;;  %v1500_v27 = vadd.f32 %v513_v24, %v1490_v16  ;;  %v429_v28 = vpop.f32.mrf.mxu0  ;;  %v458_v29 = vpop.f32.mrf.mxu1  ;;  %981 = vmatpush.msrb.mxu1 %v945_v22  ;;  %v944_v23 = vld [vmem:[#allocation4 + $0xe8] sm:$0xff]  ;;  %v943_v24 = vld [vmem:[#allocation4 + $0xe0] sm:$0xff] }
  0x9f   : > { %v1503_v31 = vadd.f32 %v429_v28, %v1476_v58  ;;  %v1506_v32 = vadd.f32 %v458_v29, %v1478_v59 }
  0xa0   : > { %v527_v33 = vmax.f32 %v1497_v26, 0.0  ;;  %v528_v34 = vmax.f32 %v1500_v27, 0.0  ;;  %982 = vmatpush.msrb.mxu1 %v944_v23  ;;  %v941_v26 = vld [vmem:[#allocation4 + $0xd0] sm:$0xff]  ;;  %v669_v27 = vld [vmem:[%s1615_s4] sm:$0x3] }
  0xa1   : > { %v529_v35 = vmax.f32 %v1503_v31, 0.0  ;;  %v530_v36 = vmax.f32 %v1506_v32, 0.0  ;;  %v671_v31 = vperm.slane %v669_v27, 0  ;;  %v939_v32 = vld [vmem:[#allocation4 + $0xc0] sm:$0xff] }
  0xa2   : > { %749 = vmatmul.f32.vlgmr.msrb.gmra.mxu2 %v527_v33  ;;  %778 = vmatmul.f32.vlgmr.msrb.gmra.mxu3 %v528_v34 }
  0xa3   : > { %694 = vmatmul.f32.gmra.mxu0 %v529_v35  ;;  %723 = vmatmul.f32.gmra.mxu1 %v530_v36 }
  0xa4   : > { %983 = vmatpush.msrb.mxu1 %v943_v24 }
  0xa5   : > { %v487_v39 = vpop.f32.mrf.mxu2  ;;  %v516_v40 = vpop.f32.mrf.mxu3 }
  0xa6   : > { %v488_v41 = vadd.f32 %v487_v39, %v1488_v15  ;;  %v517_v42 = vadd.f32 %v516_v40, %v1490_v16  ;;  %v432_v43 = vpop.f32.mrf.mxu0  ;;  %v461_v44 = vpop.f32.mrf.mxu1  ;;  %984 = vmatpush.msrb.mxu1 %v942_v25  ;;  %v935_v40 = vld [vmem:[#allocation4 + $0xa0] sm:$0xff] }
  0xa7   : > { %v433_v45 = vadd.f32 %v432_v43, %v1476_v58  ;;  %v462_v46 = vadd.f32 %v461_v44, %v1478_v59 }
  0xa8   : > { %v531_v47 = vmax.f32 %v488_v41, 0.0  ;;  %v532_v48 = vmax.f32 %v517_v42, 0.0  ;;  %985 = vmatpush.msrb.mxu1 %v941_v26  ;;  %v934_v41 = vld [vmem:[#allocation4 + $0x98] sm:$0xff] }
  0xa9   : > { %v533_v49 = vmax.f32 %v433_v45, 0.0  ;;  %v534_v50 = vmax.f32 %v462_v46, 0.0  ;;  %v933_v46 = vld [vmem:[#allocation4 + $0x90] sm:$0xff] }
  0xaa   : > { %752 = vmatmul.f32.gmra.mxu2 %v531_v47  ;;  %781 = vmatmul.f32.gmra.mxu3 %v532_v48 }
  0xab   : > { %697 = vmatmul.f32.gmra.mxu0 %v533_v49  ;;  %726 = vmatmul.f32.gmra.mxu1 %v534_v50 }
  0xac   : > { %986 = vmatpush.msrb.mxu1 %v940_v30 }
  0xad   : > { %v490_v51 = vpop.f32.mrf.mxu2  ;;  %v519_v52 = vpop.f32.mrf.mxu3 }
  0xae   : > { %v491_v53 = vadd.f32 %v490_v51, %v1488_v15  ;;  %v520_v54 = vadd.f32 %v519_v52, %v1490_v16  ;;  %v435_v55 = vpop.f32.mrf.mxu0  ;;  %v464_v56 = vpop.f32.mrf.mxu1  ;;  %987 = vmatpush.msrb.mxu1 %v939_v32 }
  0xaf   : > { %v436_v57 = vadd.f32 %v435_v55, %v1476_v58  ;;  %v465_v60 = vadd.f32 %v464_v56, %v1478_v59  ;;  %v930_v58 = vld [vmem:[#allocation4 + $0x78] sm:$0xff]  ;;  %v929_v59 = vld [vmem:[#allocation4 + $0x70] sm:$0xff] }
  0xb0   : > { %v535_v61 = vmax.f32 %v491_v53, 0.0  ;;  %v536_v62 = vmax.f32 %v520_v54, 0.0  ;;  %951 = vmatpush.msrb.mxu0 %v930_v58  ;;  %1180 = vmatpush.msrb.mxu3 %v930_v58  ;;  %v931_v53 = vld [vmem:[#allocation4 + $0x80] sm:$0xff] }
  0xb1   : > { %v537_v63 = vmax.f32 %v436_v57, 0.0  ;;  %v538_v0 = vmax.f32 %v465_v60, 0.0 }
  0xb2   : > { %755 = vmatmul.f32.gmra.mxu2 %v535_v61  ;;  %784 = vmatmul.f32.gmra.mxu3 %v536_v62 }
  0xb3   : > { %700 = vmatmul.f32.gmra.mxu0 %v537_v63  ;;  %729 = vmatmul.f32.gmra.mxu1 %v538_v0 }
  0xb4   : > { %952 = vmatpush.msrb.mxu0 %v929_v59  ;;  %1181 = vmatpush.msrb.mxu3 %v929_v59 }
  0xb5   : > { %v493_v1 = vpop.f32.mrf.mxu2  ;;  %v522_v2 = vpop.f32.mrf.mxu3 }
  0xb6   : > { %v494_v3 = vadd.f32 %v493_v1, %v1488_v15  ;;  %v523_v4 = vadd.f32 %v522_v2, %v1490_v16  ;;  %953 = vmatpush.msrb.mxu0 %v928_v9  ;;  %1182 = vmatpush.msrb.mxu3 %v928_v9  ;;  %v920_v15 = vld [vmem:[#allocation4 + $0x28] sm:$0xff]  ;;  %v919_v16 = vld [vmem:[#allocation4 + $0x20] sm:$0xff]  ;;  %v672_v9 = vperm.slane %v669_v27, 1 }
  0xb8   : > { %v539_v5 = vmax.f32 %v494_v3, 0.0  ;;  %v540_v8 = vmax.f32 %v523_v4, 0.0  ;;  %954 = vmatpush.msrb.mxu0 %v927_v10  ;;  %1183 = vmatpush.msrb.mxu3 %v927_v10 }
  0xba   : > { %758 = vmatmul.f32.gmra.mxu2 %v539_v5  ;;  %787 = vmatmul.f32.gmra.mxu3 %v540_v8 }
  0xbb   : > { %807 = vmatmul.f32.vlgmr.msra.gmra.mxu0 %v525_v12  ;;  %836 = vmatmul.f32.vlgmr.msra.gmra.mxu1 %v526_v13  ;;  %v923_v12 = vld [vmem:[#allocation4 + $0x40] sm:$0xff]  ;;  %v922_v13 = vld [vmem:[#allocation4 + $0x38] sm:$0xff] }
  0xbc   : > { %955 = vmatpush.msrb.mxu0 %v926_v6  ;;  %1184 = vmatpush.msrb.mxu3 %v926_v6 }
  0xbe   : > { %956 = vmatpush.msrb.mxu0 %v925_v7  ;;  %1185 = vmatpush.msrb.mxu3 %v925_v7 }
  0xc0   : > { %957 = vmatpush.msrb.mxu0 %v924_v11  ;;  %1186 = vmatpush.msrb.mxu3 %v924_v11 }
  0xc2   : > { %865 = vmatmul.f32.vlgmr.msra.gmra.mxu2 %v527_v33  ;;  %894 = vmatmul.f32.vlgmr.msra.gmra.mxu3 %v528_v34  ;;  %v938_v33 = vld [vmem:[#allocation4 + $0xb8] sm:$0xff] }
  0xc3   : > { %810 = vmatmul.f32.gmra.mxu0 %v529_v35  ;;  %839 = vmatmul.f32.gmra.mxu1 %v530_v36  ;;  %v937_v35 = vld [vmem:[#allocation4 + $0xb0] sm:$0xff] }
  0xc4   : > { %958 = vmatpush.msrb.mxu0 %v923_v12  ;;  %1187 = vmatpush.msrb.mxu3 %v923_v12 }
  0xc5   : > { %988 = vmatpush.msrb.mxu1 %v938_v33 }
  0xc6   : > { %959 = vmatpush.msrb.mxu0 %v922_v13  ;;  %1188 = vmatpush.msrb.mxu3 %v922_v13 }
  0xc7   : > { %989 = vmatpush.msrb.mxu1 %v937_v35 }
  0xc8   : > { %960 = vmatpush.msrb.mxu0 %v921_v14  ;;  %1189 = vmatpush.msrb.mxu3 %v921_v14 }
  0xc9   : > { %990 = vmatpush.msrb.mxu1 %v936_v38 }
  0xca   : > { %868 = vmatmul.f32.gmra.mxu2 %v531_v47  ;;  %897 = vmatmul.f32.gmra.mxu3 %v532_v48 }
  0xcb   : > { %813 = vmatmul.f32.gmra.mxu0 %v533_v49  ;;  %842 = vmatmul.f32.gmra.mxu1 %v534_v50  ;;  %v932_v50 = vld [vmem:[#allocation4 + $0x88] sm:$0xff] }
  0xcc   : > { %961 = vmatpush.msrb.mxu0 %v920_v15  ;;  %1190 = vmatpush.msrb.mxu3 %v920_v15 }
  0xcd   : > { %991 = vmatpush.msrb.mxu1 %v935_v40 }
  0xce   : > { %962 = vmatpush.msrb.mxu0 %v919_v16  ;;  %1191 = vmatpush.msrb.mxu3 %v919_v16 }
  0xcf   : > { %992 = vmatpush.msrb.mxu1 %v934_v41 }
  0xd0   : > { %963 = vmatpush.msrb.mxu0 %v918_v17  ;;  %1192 = vmatpush.msrb.mxu3 %v918_v17 }
  0xd1   : > { %993 = vmatpush.msrb.mxu1 %v933_v46 }
  0xd2   : > { %871 = vmatmul.f32.gmra.mxu2 %v535_v61  ;;  %900 = vmatmul.f32.gmra.mxu3 %v536_v62 }
  0xd3   : > { %816 = vmatmul.f32.gmra.mxu0 %v537_v63  ;;  %845 = vmatmul.f32.gmra.mxu1 %v538_v0 }
  0xd4   : > { %964 = vmatpush.msrb.mxu0 %v917_v18  ;;  %1193 = vmatpush.msrb.mxu3 %v917_v18 }
  0xd5   : > { %994 = vmatpush.msrb.mxu1 %v932_v50  ;;  %v1026_v50 = vld [vmem:[%s1618_s7 + $0x68] sm:$0xff] }
  0xd6   : > { %965 = vmatpush.msrb.mxu0 %v916_v19  ;;  %1194 = vmatpush.msrb.mxu3 %v916_v19 }
  0xd7   : > { %995 = vmatpush.msrb.mxu1 %v931_v53  ;;  %v1023_v53 = vld [vmem:[%s1618_s7 + $0x50] sm:$0xff] }
  0xd8   : > { %966 = vmatpush.msrb.mxu0 %v915_v20  ;;  %1195 = vmatpush.msrb.mxu3 %v915_v20 }
  0xda   : > { %874 = vmatmul.f32.gmra.mxu2 %v539_v5  ;;  %903 = vmatmul.f32.gmra.mxu3 %v540_v8 }
 0x118   : > { %v692_v28 = vpop.f32.mrf.mxu0  ;;  %v721_v29 = vpop.f32.mrf.mxu1 }
 0x119   : > { %v693_v34 = vadd.f32 %v692_v28, %v671_v31 }
 0x11b   : > { %v722_v39 = vadd.f32 %v721_v29, %v693_v34 }
 0x120   : > { %v695_v36 = vpop.f32.mrf.mxu0  ;;  %v724_v37 = vpop.f32.mrf.mxu1 }
 0x121   : > { %v696_v44 = vadd.f32 %v695_v36, %v671_v31 }
 0x123   : > { %v725_v51 = vadd.f32 %v724_v37, %v696_v44 }
 0x125   : > { %v750_v42 = vpop.f32.mrf.mxu2  ;;  %v779_v43 = vpop.f32.mrf.mxu3 }
 0x126   : > { %v751_v45 = vadd.f32 %v750_v42, %v722_v39 }
 0x128   : > { %v780_v47 = vadd.f32 %v779_v43, %v751_v45  ;;  %v698_v48 = vpop.f32.mrf.mxu0  ;;  %v727_v49 = vpop.f32.mrf.mxu1 }
 0x129   : > { %v699_v56 = vadd.f32 %v698_v48, %v671_v31  ;;  %v1028_v48 = vld [vmem:[%s1618_s7 + $0x78] sm:$0xff] }
 0x12a   : > { %v907_v52 = vmax.f32 %v780_v47, 0.0  ;;  %1033 = vmatpush.msrb.mxu2 %v1028_v48 }
 0x12b   : > { %v728_v62 = vadd.f32 %v727_v49, %v699_v56  ;;  %v1027_v49 = vld [vmem:[%s1618_s7 + $0x70] sm:$0xff]  ;;  %v1020_v56 = vld [vmem:[%s1618_s7 + $0x38] sm:$0xff] }
 0x12c   : > { %967 = vmatmul.f32.vlgmr.msrb.gmra.mxu0 %v907_v52  ;;  %1034 = vmatpush.msrb.mxu2 %v1027_v49  ;;  %v1024_v52 = vld [vmem:[%s1618_s7 + $0x58] sm:$0xff] }
 0x12d   : > { %v753_v54 = vpop.f32.mrf.mxu2  ;;  %v782_v55 = vpop.f32.mrf.mxu3 }
 0x12e   : > { %v754_v57 = vadd.f32 %v753_v54, %v725_v51  ;;  %v1025_v51 = vld [vmem:[%s1618_s7 + $0x60] sm:$0xff]  ;;  %1035 = vmatpush.msrb.mxu2 %v1026_v50  ;;  %v1022_v54 = vld [vmem:[%s1618_s7 + $0x48] sm:$0xff] }
 0x130   : > { %v783_v60 = vadd.f32 %v782_v55, %v754_v57  ;;  %v701_v61 = vpop.f32.mrf.mxu0  ;;  %v730_v0 = vpop.f32.mrf.mxu1  ;;  %1036 = vmatpush.msrb.mxu2 %v1025_v51  ;;  %v1021_v55 = vld [vmem:[%s1618_s7 + $0x40] sm:$0xff]  ;;  %v1019_v57 = vld [vmem:[%s1618_s7 + $0x30] sm:$0xff] }
 0x131   : > { %v702_v3 = vadd.f32 %v701_v61, %v671_v31  ;;  %v1017_v61 = vld [vmem:[%s1618_s7 + $0x20] sm:$0xff] }
 0x132   : > { %v909_v63 = vmax.f32 %v783_v60, 0.0  ;;  %1037 = vmatpush.msrb.mxu2 %v1024_v52  ;;  %v1018_v60 = vld [vmem:[%s1618_s7 + $0x28] sm:$0xff] }
 0x133   : > { %v731_v58 = vadd.f32 %v730_v0, %v702_v3  ;;  %v1014_v0 = vld [vmem:[%s1618_s7 + $0x8] sm:$0xff] }
 0x134   : > { %970 = vmatmul.f32.vlgmr.msrb.gmra.mxu3 %v909_v63  ;;  %1038 = vmatpush.msrb.mxu2 %v1023_v53  ;;  %v1015_v63 = vld [vmem:[%s1618_s7 + $0x10] sm:$0xff] }
 0x135   : > { %v756_v1 = vpop.f32.mrf.mxu2  ;;  %v785_v2 = vpop.f32.mrf.mxu3 }
 0x136   : > { %v757_v4 = vadd.f32 %v756_v1, %v728_v62  ;;  %1039 = vmatpush.msrb.mxu2 %v1022_v54  ;;  %v1016_v62 = vld [vmem:[%s1618_s7 + $0x18] sm:$0xff]  ;;  %v1013_v1 = vld [vmem:[%s1618_s7] sm:$0xff] }
 0x138   : > { %v786_v5 = vadd.f32 %v785_v2, %v757_v4  ;;  %v808_v8 = vpop.f32.mrf.mxu0  ;;  %v837_v10 = vpop.f32.mrf.mxu1  ;;  %1040 = vmatpush.msrb.mxu2 %v1021_v55  ;;  %v1229_v2 = vld [vmem:[%s1617_s6] ss:$0 sm:$0xff] }
 0x139   : > { %v809_v12 = vadd.f32 %v808_v8, %v672_v9 }
 0x13a   : > { %v911_v59 = vmax.f32 %v786_v5, 0.0  ;;  %1041 = vmatpush.msrb.mxu2 %v1020_v56 }
 0x13b   : > { %v838_v16 = vadd.f32 %v837_v10, %v809_v12 }
 0x13c   : > { %973 = vmatmul.f32.gmra.mxu3 %v911_v59  ;;  %1042 = vmatpush.msrb.mxu2 %v1019_v57 }
 0x13d   : > { %v759_v6 = vpop.f32.mrf.mxu2  ;;  %v788_v7 = vpop.f32.mrf.mxu3 }
 0x13e   : > { %v760_v11 = vadd.f32 %v759_v6, %v731_v58  ;;  %1043 = vmatpush.msrb.mxu2 %v1018_v60 }
 0x140   : > { %v789_v13 = vadd.f32 %v788_v7, %v760_v11  ;;  %v811_v14 = vpop.f32.mrf.mxu0  ;;  %v840_v20 = vpop.f32.mrf.mxu1  ;;  %1044 = vmatpush.msrb.mxu2 %v1017_v61 }
 0x141   : > { %v812_v21 = vadd.f32 %v811_v14, %v672_v9 }
 0x142   : > { %v913_v15 = vmax.f32 %v789_v13, 0.0  ;;  %1045 = vmatpush.msrb.mxu2 %v1016_v62 }
 0x143   : > { %v841_v25 = vadd.f32 %v840_v20, %v812_v21  ;;  %v1230_v21 = vld [vmem:[%s1619_s8] ss:$0 sm:$0xff] }
 0x144   : > { %976 = vmatmul.f32.gmra.mxu3 %v913_v15  ;;  %1046 = vmatpush.msrb.mxu2 %v1015_v63 }
 0x145   : > { %v866_v17 = vpop.f32.mrf.mxu2  ;;  %v895_v18 = vpop.f32.mrf.mxu3 }
 0x146   : > { %v867_v19 = vadd.f32 %v866_v17, %v838_v16  ;;  %1047 = vmatpush.msrb.mxu2 %v1014_v0 }
 0x148   : > { %v896_v22 = vadd.f32 %v895_v18, %v867_v19  ;;  %v814_v24 = vpop.f32.mrf.mxu0  ;;  %v843_v31 = vpop.f32.mrf.mxu1  ;;  %1048 = vmatpush.msrb.mxu2 %v1013_v1 }
 0x149   : > { %v815_v29 = vadd.f32 %v814_v24, %v672_v9 }
 0x14a   : > { %v908_v23 = vmax.f32 %v896_v22, 0.0 }
 0x14b   : > { %v844_v33 = vadd.f32 %v843_v31, %v815_v29 }
 0x14c   : > { %996 = vmatmul.f32.vlgmr.msrb.gmra.mxu1 %v908_v23 }
 0x14d   : > { %v869_v26 = vpop.f32.mrf.mxu2  ;;  %v898_v27 = vpop.f32.mrf.mxu3 }
 0x14e   : > { %v870_v28 = vadd.f32 %v869_v26, %v841_v25 }
 0x150   : > { %v899_v30 = vadd.f32 %v898_v27, %v870_v28  ;;  %v817_v34 = vpop.f32.mrf.mxu0  ;;  %v846_v41 = vpop.f32.mrf.mxu1 }
 0x151   : > { %v818_v38 = vadd.f32 %v817_v34, %v672_v9 }
 0x152   : > { %v910_v32 = vmax.f32 %v899_v30, 0.0 }
 0x153   : > { %v847_v42 = vadd.f32 %v846_v41, %v818_v38 }
 0x154   : > { %999 = vmatmul.f32.gmra.mxu1 %v910_v32 }
 0x155   : > { %v872_v35 = vpop.f32.mrf.mxu2  ;;  %v901_v36 = vpop.f32.mrf.mxu3 }
 0x156   : > { %v873_v37 = vadd.f32 %v872_v35, %v844_v33 }
 0x158   : > { %v902_v39 = vadd.f32 %v901_v36, %v873_v37 }
 0x15a   : > { %v912_v40 = vmax.f32 %v902_v39, 0.0 }
 0x15c   : > { %1002 = vmatmul.f32.gmra.mxu1 %v912_v40 }
 0x15d   : > { %v875_v43 = vpop.f32.mrf.mxu2  ;;  %v904_v45 = vpop.f32.mrf.mxu3 }
 0x15e   : > { %v876_v44 = vadd.f32 %v875_v43, %v847_v42 }
 0x160   : > { %v905_v46 = vadd.f32 %v904_v45, %v876_v44 }
 0x162   : > { %v914_v47 = vmax.f32 %v905_v46, 0.0 }
 0x164   : > { %1005 = vmatmul.f32.gmra.mxu1 %v914_v47 }
 0x1a9   : > { %v968_v3 = vpop.f32.mrf.mxu0 }
 0x1aa   : > { %v969_v4 = vadd.f32 %v1229_v2, %v968_v3 }
 0x1b7   : > { %v971_v5 = vpop.f32.mrf.mxu3 }
 0x1b8   : > { %v972_v9 = vadd.f32 %v1229_v2, %v971_v5 }
 0x1bf   : > { %v974_v7 = vpop.f32.mrf.mxu3 }
 0x1c0   : > { %v975_v12 = vadd.f32 %v1229_v2, %v974_v7 }
 0x1c7   : > { %v977_v16 = vpop.f32.mrf.mxu3 }
 0x1c8   : > { %v978_v17 = vadd.f32 %v1229_v2, %v977_v16 }
 0x1c9   : > { %v997_v8 = vpop.f32.mrf.mxu1 }
 0x1ca   : > { %v998_v58 = vadd.f32 %v997_v8, %v969_v4 }
 0x1cc   : > { %v1009_v59 = vmax.f32 %v998_v58, 0.0 }
 0x1ce   : > { %1049 = vmatmul.f32.vlgmr.msrb.gmra.mxu2 %v1009_v59 }
 0x1d1   : > { %v1000_v10 = vpop.f32.mrf.mxu1 }
 0x1d2   : > { %v1001_v6 = vadd.f32 %v1000_v10, %v972_v9 }
 0x1d4   : > { %v1010_v11 = vmax.f32 %v1001_v6, 0.0 }
 0x1d6   : > { %1052 = vmatmul.f32.gmra.mxu2 %v1010_v11 }
 0x1d9   : > { %v1003_v13 = vpop.f32.mrf.mxu1 }
 0x1da   : > { %v1004_v14 = vadd.f32 %v1003_v13, %v975_v12 }
 0x1dc   : > { %v1011_v15 = vmax.f32 %v1004_v14, 0.0 }
 0x1de   : > { %1055 = vmatmul.f32.gmra.mxu2 %v1011_v15 }
 0x1e1   : > { %v1006_v18 = vpop.f32.mrf.mxu1 }
 0x1e2   : > { %v1007_v19 = vadd.f32 %v1006_v18, %v978_v17 }
 0x1e4   : > { %v1012_v20 = vmax.f32 %v1007_v19, 0.0 }
 0x1e6   : > { %1058 = vmatmul.f32.gmra.mxu2 %v1012_v20 }
 0x251   : > { %v1050_v22 = vpop.f32.mrf.mxu2 }
 0x252   : > { %v1051_v23 = vadd.f32 %v1230_v21, %v1050_v22 }
 0x254   : > { %1231 = vtanh.f32 %v1051_v23 }
 0x259   : > { %v1053_v24 = vpop.f32.mrf.mxu2 }
 0x25a   : > { %v1232_v25 = vpop.eup %1231  ;;  %v1054_v26 = vadd.f32 %v1230_v21, %v1053_v24 }
 0x25b   : > { %1067 = vst.msk [vmem:[%s368_s24] sm:$0xff] %vm1066_vm1, %v1232_v25 }
 0x25c   : > { %1233 = vtanh.f32 %v1054_v26 }
 0x261   : > { %v1056_v27 = vpop.f32.mrf.mxu2 }
 0x262   : > { %v1234_v28 = vpop.eup %1233  ;;  %v1057_v29 = vadd.f32 %v1230_v21, %v1056_v27 }
 0x263   : > { %1068 = vst.msk [vmem:[%s368_s24 + $0x8] sm:$0xff] %vm1066_vm1, %v1234_v28 }
 0x264   : > { %1235 = vtanh.f32 %v1057_v29 }
 0x269   : > { %v1059_v30 = vpop.f32.mrf.mxu2 }
 0x26a   : > { %v1236_v31 = vpop.eup %1235  ;;  %v1060_v32 = vadd.f32 %v1230_v21, %v1059_v30 }
 0x26b   : > { %1069 = vst.msk [vmem:[%s368_s24 + $0x10] sm:$0xff] %vm1066_vm1, %v1236_v31 }
 0x26c   : > { %1237 = vtanh.f32 %v1060_v32 }
 0x272   : > { %v1238_v33 = vpop.eup %1237 }
 0x273   : > { %1070 = vst.msk [vmem:[%s368_s24 + $0x18] sm:$0xff] %vm1066_vm1, %v1238_v33 }
 0x274 PF: > { %s21_s30 = sadd.s32 1, %s1313_s30  }
 0x275   : > { %p18_p7 = scmp.ge.s32.totalorder %s21_s30, 5  }
 0x277   :  { %20 = sbr.rel (!%p18_p7) target bundleno = 2 (0x2), region = 95 }
 0x27c   :  { %1093 = vsyncpa [#allocation3], 1 }
 0x27d   :  { %1095 = vsyncpa [#allocation3 + $0x1], 1 }
 0x27e   :  { %1096 = vsyncpa [#allocation5], 1 }

</bundles_post_ra>
